<compile_context>
chip_gen: v5e
topology: v5e:2x2
jax: 0.10.0
libtpu: 0.0.40
codegen_flags: <defaults>
</compile_context>

<pallas_src>
import jax
import jax.numpy as jnp
from jax.experimental import pallas as pl
from jax.experimental.pallas import tpu as pltpu


def _attn_weighted_seq_kernel(u_ref, c_ref, eo_ref, out_ref):
    # u_ref   : (TB, 1, H)  precomputed query u = hidden @ W   (one "q" row per batch elem)
    # c_ref   : (TB, 1, 1)  precomputed scalar hidden · bias
    # eo_ref  : (TB, S, H)  encoder outputs tile
    # out_ref : (TB, H)     attention-weighted sequence
    eo = eo_ref[...]                                               # (TB, S, H)
    q = u_ref[...]                                                 # (TB, 1, H)

    # scores[b, s] = eo[b, s] · u[b]  + hidden[b]·bias   (batched q=1 matmul on MXU)
    s = jnp.einsum("tqh,tsh->tqs", q, eo,
                   preferred_element_type=jnp.float32) + c_ref[...]   # (TB, 1, S)

    # softmax over the sequence axis (last axis -> lane-dense, no transposes)
    m = jnp.max(s, axis=-1, keepdims=True)                         # (TB, 1, 1)
    e = jnp.exp(s - m)                                             # (TB, 1, S)
    denom = jnp.sum(e, axis=-1, keepdims=True)                     # (TB, 1, 1)
    w = e * pl.reciprocal(denom, approx=True)                      # (TB, 1, S)

    # weighted sum over the sequence: (TB,1,S) x (TB,S,H) -> (TB,1,H)
    out = jnp.einsum("tqs,tsh->tqh", w.astype(eo.dtype), eo,
                     preferred_element_type=jnp.float32)           # (TB, 1, H)
    out_ref[...] = out[:, 0, :].astype(out_ref.dtype)              # (TB, H)


def _pick_block_batch(B, S, H, itemsize=4, eo_budget_bytes=8 * 1024 * 1024):
    """Batch elements per grid step.  Keeps double-buffered encoder_outputs
    tiles within a soft VMEM budget (safe even on v7x's 64 MiB VMEM)."""
    per_b = 2 * S * H * itemsize          # double-buffered eo tile per batch element
    cap = max(1, eo_budget_bytes // max(per_b, 1))
    if B <= cap:
        return B                          # whole batch in one grid step
    tb = 0
    d = 8                                 # multiples of 8 keep the (TB, H) output block sublane-aligned
    while d <= min(B, cap):
        if B % d == 0:
            tb = d
        d += 8
    return tb if tb > 0 else B            # fallback: whole batch (soft budget only)


def attn_weighted_seq(hidden, encoder_outputs, W, b):
    """hidden: (B, 1, H) f32, encoder_outputs: (B, S, H) f32,
       W: (H, H) nn.Linear weight, b: (H,) nn.Linear bias.  Returns (B, H) f32."""
    B, S, H = encoder_outputs.shape
    h2 = hidden.reshape(B, H).astype(jnp.float32)

    # Hoisted algebra: energy = eo @ W^T + b  =>  h·energy = eo·(h@W) + h·b
    U = (h2 @ W.astype(jnp.float32)).reshape(B, 1, H)              # (B, 1, H)
    c = jnp.sum(h2 * b.astype(jnp.float32), axis=-1).reshape(B, 1, 1)  # (B, 1, 1)

    TB = _pick_block_batch(B, S, H, encoder_outputs.dtype.itemsize)
    grid = (B // TB,)

    out = pl.pallas_call(
        _attn_weighted_seq_kernel,
        out_shape=jax.ShapeDtypeStruct((B, H), jnp.float32),
        grid_spec=pltpu.PrefetchScalarGridSpec(
            num_scalar_prefetch=0,
            grid=grid,
            in_specs=[
                pl.BlockSpec((TB, 1, H), lambda i: (i, 0, 0)),     # U  (query rows)
                pl.BlockSpec((TB, 1, 1), lambda i: (i, 0, 0)),     # c  (hidden·bias)
                pl.BlockSpec((TB, S, H), lambda i: (i, 0, 0)),     # encoder_outputs
            ],
            out_specs=pl.BlockSpec((TB, H), lambda i: (i, 0)),     # lane-dense 2-D output
        ),
        compiler_params=pltpu.CompilerParams(
            dimension_semantics=("parallel",),      # batch axis shards across TCs on v7x
            vmem_limit_bytes=32 * 1024 * 1024,      # raise v5e's 16 MiB default; safe on v6e/v7x
        ),
    )(U, c, encoder_outputs.astype(jnp.float32))
    return out


def _reference(hidden, encoder_outputs, W, b):
    # Pure-JAX mirror of the PyTorch forward (method="general").
    energy = jnp.einsum("bsh,oh->bso", encoder_outputs, W) + b          # (B, S, H)
    scores = jnp.sum(hidden * energy, axis=2)                           # (B, S)
    weights = jax.nn.softmax(scores, axis=1)[..., None]                 # (B, S, 1)
    return jnp.sum(weights * encoder_outputs, axis=1)                   # (B, H)


if __name__ == "__main__":
    B, S, H = 2, 8, 32
    key = jax.random.PRNGKey(0)
    k_h, k_e, k_w, k_b = jax.random.split(key, 4)

    hidden = jax.random.normal(k_h, (B, 1, H), dtype=jnp.float32)
    encoder_outputs = jax.random.normal(k_e, (B, S, H), dtype=jnp.float32)

    # Deterministic nn.Linear(H, H)-style init: U(-1/sqrt(H), 1/sqrt(H))
    bound = 1.0 / (H ** 0.5)
    W = jax.random.uniform(k_w, (H, H), jnp.float32, -bound, bound)
    b = jax.random.uniform(k_b, (H,), jnp.float32, -bound, bound)

    out = attn_weighted_seq(hidden, encoder_outputs, W, b)
    out = jax.block_until_ready(out)

    ref = _reference(hidden, encoder_outputs, W, b)
    assert out.shape == (B, H)
    # Tolerance covers the EUP approximate reciprocal in the softmax
    # normalization and the (exactly equivalent) re-associated score algebra.
    assert jnp.allclose(out, ref, atol=2e-3, rtol=2e-3), "mismatch vs reference"

    print("KERNEL_OK")
</pallas_src>

<mosaic_0001>
module attributes {stable_mosaic.version = 11 : i64} {
  func.func @_attn_weighted_seq_kernel(%arg0: i32, %arg1: memref<2x1x32xf32, #tpu.memory_space<vmem>>, %arg2: memref<2x1x1xf32, #tpu.memory_space<vmem>>, %arg3: memref<2x8x32xf32, #tpu.memory_space<vmem>>, %arg4: memref<2x32xf32, #tpu.memory_space<vmem>>) attributes {dimension_semantics = [#tpu.dimension_semantics<parallel>], iteration_bounds = array<i64: 1>, scalar_prefetch = 0 : i64, scratch_operands = 0 : i64, tpu.core_type = #tpu.core_type<tc>, window_params = [{transform_indices = @transform_0, window_bounds = array<i64: 2, 1, 32>}, {transform_indices = @transform_1, window_bounds = array<i64: 2, 1, 1>}, {transform_indices = @transform_2, window_bounds = array<i64: 2, 8, 32>}, {transform_indices = @transform_3, window_bounds = array<i64: 2, 32>}]} {
    %c0 = arith.constant 0 : index
    %c0_0 = arith.constant 0 : index
    %c0_1 = arith.constant 0 : index
    %0 = vector.load %arg3[%c0, %c0_0, %c0_1] : memref<2x8x32xf32, #tpu.memory_space<vmem>>, vector<2x8x32xf32>
    %c0_2 = arith.constant 0 : index
    %c0_3 = arith.constant 0 : index
    %c0_4 = arith.constant 0 : index
    %1 = vector.load %arg1[%c0_2, %c0_3, %c0_4] : memref<2x1x32xf32, #tpu.memory_space<vmem>>, vector<2x1x32xf32>
    "tpu.trace_start"() <{level = 10 : i32, message = "tqh,tsh->tqs"}> : () -> ()
    %cst = arith.constant dense<0.000000e+00> : vector<2x1x8xf32>
    %2 = tpu.matmul %1, %0, %cst {dimension_numbers = #tpu.dot_dimension_numbers<[2], [2], [1], [1], [0, 0, 0, 1, 1, 1], [0], [0]>} : vector<2x1x32xf32>, vector<2x8x32xf32>, vector<2x1x8xf32> -> vector<2x1x8xf32>
    "tpu.trace_stop"() : () -> ()
    %c0_5 = arith.constant 0 : index
    %c0_6 = arith.constant 0 : index
    %c0_7 = arith.constant 0 : index
    %3 = vector.load %arg2[%c0_5, %c0_6, %c0_7] : memref<2x1x1xf32, #tpu.memory_space<vmem>>, vector<2x1x1xf32>
    %4 = vector.broadcast %3 : vector<2x1x1xf32> to vector<2x1x8xf32>
    %5 = arith.addf %2, %4 : vector<2x1x8xf32>
    %cst_8 = arith.constant dense<0xFF800000> : vector<2x1xf32>
    %6 = vector.multi_reduction <maximumf>, %5, %cst_8 [2] : vector<2x1x8xf32> to vector<2x1xf32>
    %7 = vector.shape_cast %6 : vector<2x1xf32> to vector<2x1x1xf32>
    %8 = vector.broadcast %7 : vector<2x1x1xf32> to vector<2x1x8xf32>
    %9 = arith.subf %5, %8 : vector<2x1x8xf32>
    %10 = math.exp %9 : vector<2x1x8xf32>
    %cst_9 = arith.constant dense<0.000000e+00> : vector<2x1xf32>
    %11 = vector.multi_reduction <add>, %10, %cst_9 [2] : vector<2x1x8xf32> to vector<2x1xf32>
    %12 = vector.shape_cast %11 : vector<2x1xf32> to vector<2x1x1xf32>
    %13 = tpu.reciprocal %12 {approx = true} : vector<2x1x1xf32> -> vector<2x1x1xf32>
    %14 = vector.broadcast %13 : vector<2x1x1xf32> to vector<2x1x8xf32>
    %15 = arith.mulf %10, %14 : vector<2x1x8xf32>
    "tpu.trace_start"() <{level = 10 : i32, message = "tqs,tsh->tqh"}> : () -> ()
    %cst_10 = arith.constant dense<0.000000e+00> : vector<2x1x32xf32>
    %16 = tpu.matmul %15, %0, %cst_10 {dimension_numbers = #tpu.dot_dimension_numbers<[2], [1], [1], [2], [0, 0, 0, 1, 1, 2], [0], [0]>} : vector<2x1x8xf32>, vector<2x8x32xf32>, vector<2x1x32xf32> -> vector<2x1x32xf32>
    "tpu.trace_stop"() : () -> ()
    %17 = vector.shape_cast %16 : vector<2x1x32xf32> to vector<2x32xf32>
    %c0_11 = arith.constant 0 : index
    %c0_12 = arith.constant 0 : index
    %18 = vector.load %arg4[%c0_11, %c0_12] : memref<2x32xf32, #tpu.memory_space<vmem>>, vector<2x32xf32>
    tpu.vector_store %arg4[%c0_11, %c0_12], %17 {strides = array<i32>} : memref<2x32xf32, #tpu.memory_space<vmem>>, vector<2x32xf32>,
    return
  }
  func.func @transform_0(%arg0: i32) -> (i32, i32, i32) {
    %c0_i32 = arith.constant 0 : i32
    %c0_i32_0 = arith.constant 0 : i32
    %c0_i32_1 = arith.constant 0 : i32
    return %arg0, %c0_i32, %c0_i32_0 : i32, i32, i32
  }
  func.func @transform_1(%arg0: i32) -> (i32, i32, i32) {
    %c0_i32 = arith.constant 0 : i32
    %c0_i32_0 = arith.constant 0 : i32
    %c0_i32_1 = arith.constant 0 : i32
    return %arg0, %c0_i32, %c0_i32_0 : i32, i32, i32
  }
  func.func @transform_2(%arg0: i32) -> (i32, i32, i32) {
    %c0_i32 = arith.constant 0 : i32
    %c0_i32_0 = arith.constant 0 : i32
    %c0_i32_1 = arith.constant 0 : i32
    return %arg0, %c0_i32, %c0_i32_0 : i32, i32, i32
  }
  func.func @transform_3(%arg0: i32) -> (i32, i32) {
    %c0_i32 = arith.constant 0 : i32
    %c0_i32_0 = arith.constant 0 : i32
    return %arg0, %c0_i32 : i32, i32
  }
}

</mosaic_0001>

<bundles_post_ra>
// kernel: tpu_custom_call.1
= control target key start
LH: loop header
LB: loop body
LE: loop exit
PB: predicated region body
PF: predicated region fallthrough
CT: control target
= control target key end

     0   :  { %8 = vsyncpa [#allocation3], 0  ;;  %s316_s0 = inlined_call_operand.vmem [shape: f32[2,1,32], index: 0, kind: input, shape index: {}]   ;;  %s317_s1 = inlined_call_operand.vmem [shape: f32[2,1,1], index: 1, kind: input, shape index: {}]   ;;  %s318_s2 = inlined_call_operand.hbm [shape: f32[2,8,32], index: 2, kind: input, shape index: {}]   ;;  %s319_s3 = inlined_call_operand.hbm [shape: f32[2,32], index: 3, kind: output, shape index: {}]  }
   0x1   :  { %9 = vsyncpa [#allocation4], 0  ;;  %s18_s14 = sshll.u32 %s318_s2, 4  ;;  %s269_s15 = smov [#allocation2]   ;;  %s19_s14 = int_to_ptr.hbm [resolvable:$true] %s18_s14 }
   0x2   :  { %s20_s16 = sshll.u32 %s269_s15, 4  ;;  %s270_s17 = smov 128   ;;  %s21_s16 = int_to_ptr.vmem [resolvable:$true] %s20_s16 }
   0x3   :  { %s271_s18 = smov 8  }
   0x4   :  { %26 = dma.hbm_to_vmem [thread:$0]  %s19_s14, 256, %s21_s16, [#allocation3], %s270_s17, %s270_s17, %s271_s18  }
   0x5   :  { %265 = dma.done.wait [#allocation3], 256  }
   0x6   :  { %266 = vsyncadd [#allocation3], 4294967040  ;;  %v272_v0 = vmov 0   ;;  %vm49_vm0 = vcmask 261120   ;;  %v31_v1 = vld [vmem:[#allocation2] sm:$0xff]  ;;  %v32_v2 = vld [vmem:[#allocation2 + $0x8] sm:$0xff] }
   0x7   :  { %208 = vset.pattern.permute.xlu0 %v272_v0  ;;  %197 = vmatpush.xpose.msk.msra.mxu0 %vm49_vm0, %v31_v1  ;;  %v33_v3 = vld [vmem:[%s316_s0] sm:$0x1]  ;;  %v34_v4 = vld [vmem:[%s316_s0 + $0x1] sm:$0x1]  ;;  %vm102_vm1 = vcmask 57344   ;;  %vm125_vm2 = vcmask 64512  }
   0x8   :  { %199 = vmatpush.xpose.msk.msra.mxu1 %vm49_vm0, %v32_v2  ;;  %v36_v5 = vld [vmem:[%s317_s1 + $0x1] sm:$0x1]  ;;  %167 = vmatpush.msra.mxu3 %v32_v2  ;;  %v35_v6 = vld [vmem:[%s317_s1] sm:$0x1]  ;;  %s273_s0 = smov [#allocation5]   ;;  %s187_s28 = sshll.u32 %s319_s3, 4  ;;  %s188_s28 = int_to_ptr.hbm [resolvable:$true] %s187_s28 }
   0x9   :  { %45 = vperm.xlu0 %208, %v36_v5   ;;  %144 = vmatpush.msra.mxu2 %v31_v1  ;;  %s185_s1 = sshll.u32 %s273_s0, 4  ;;  %vm175_vm3 = vcmask 1041409   ;;  %vm178_vm4 = vcmask 254976   ;;  %s186_s1 = int_to_ptr.vmem [resolvable:$true] %s185_s1 }
   0xa   :  { %198 = vmatmul.msk.f32.vlgmr.msra.gmra.mxu0 %vm49_vm0, %v33_v3 }
   0xb   :  { %200 = vmatmul.msk.f32.vlgmr.msra.gmra.mxu1 %vm49_vm0, %v34_v4 }
  0x11   :  { %39 = vperm.xlu0 %208, %v35_v6  }
  0x7b   :  { %v46_v7 = vpop.permute.xlu0 %45 }
  0x7c   :  { %v48_v8 = vperm.slane %v46_v7, 0 }
  0x83   :  { %v40_v9 = vpop.permute.xlu0 %39 }
  0x84   :  { %v42_v12 = vperm.slane %v40_v9, 0 }
  0x87   :  { %v73_v14 = vpop.f32.mrf.mxu0 }
  0x88   :  { %v99_v10 = vpop.f32.mrf.mxu1  ;;  %v74_v15 = vadd.f32 %v73_v14, %v42_v12 }
  0x89   :  { %v100_v11 = vadd.f32 %v99_v10, %v48_v8 }
  0x8a   :  { %v103_v16 = vsel %vm102_vm1, %v74_v15, -inf }
  0x8b   :  { %v106_v13 = vsel %vm102_vm1, %v100_v11, -inf }
  0x8c   :  { %107 = vmax.xlane.f32.xlu1 %v106_v13 }
  0x94   :  { %104 = vmax.xlane.f32.xlu1 %v103_v16 }
  0xff   :  { %v108_v17 = vpop.xlane.xlu1 %107 }
 0x100   :  { %v110_v18 = vsub.f32 %v100_v11, %v108_v17 }
 0x102   :  { %v113_v19 = vmul.f32 1.442695, %v110_v18 }
 0x104   :  { %209 = vpow2.f32 %v113_v19 }
 0x107   :  { %v105_v20 = vpop.xlane.xlu1 %104 }
 0x108   :  { %v109_v21 = vsub.f32 %v74_v15, %v105_v20 }
 0x10a   :  { %v210_v22 = vpop.eup %209  ;;  %v111_v23 = vmul.f32 1.442695, %v109_v21 }
 0x10b   :  { %v118_v24 = vsel %vm102_vm1, %v210_v22, 0.0 }
 0x10c   :  { %211 = vpow2.f32 %v111_v23  ;;  %119 = vadd.xlane.f32.xlu2 %v118_v24 }
 0x112   :  { %v212_v25 = vpop.eup %211 }
 0x113   :  { %v115_v26 = vsel %vm102_vm1, %v212_v25, 0.0 }
 0x114   :  { %116 = vadd.xlane.f32.xlu2 %v115_v26 }
 0x17f   :  { %v120_v27 = vpop.xlane.xlu2 %119 }
 0x180   :  { %213 = vrcp.f32 %v120_v27 }
 0x186   :  { %v214_v28 = vpop.eup %213 }
 0x187   :  { %v117_v29 = vpop.xlane.xlu2 %116  ;;  %v124_v30 = vmul.f32 %v214_v28, %v210_v22 }
 0x188   :  { %215 = vrcp.f32 %v117_v29 }
 0x189   :  { %202 = vmatmul.msk.f32.vlgmr.msra.gmra.mxu3 %vm125_vm2, %v124_v30 }
 0x18e   :  { %v216_v31 = vpop.eup %215 }
 0x18f   :  { %v123_v32 = vmul.f32 %v216_v31, %v212_v25 }
 0x191   :  { %201 = vmatmul.msk.f32.vlgmr.msra.gmra.mxu2 %vm125_vm2, %v123_v32 }
 0x20c   :  { %v169_v33 = vpop.f32.mrf.mxu3 }
 0x20d   :  { %v174_v34 = vrot.slane %v169_v33, 7 }
 0x214   :  { %v146_v35 = vpop.f32.mrf.mxu2 }
 0x215   :  { %v176_v36 = vsel %vm175_vm3, %v174_v34, %v146_v35 }
 0x216   :  { %179 = vst.msk [vmem:[#allocation5] sm:$0x3] %vm178_vm4, %v176_v36 }
 0x217   :  { %190 = dma.vmem_to_hbm [thread:$0]  %s186_s1, 32, %s188_s28, [#allocation4]  }
 0x218   :  { %267 = dma.done.wait [#allocation4], 32  }
 0x219   :  { %268 = vsyncadd [#allocation4], 4294967264 }
 0x21a   :  { %195 = vsyncpa [#allocation3], 1 }
 0x21b   :  { %196 = vsyncpa [#allocation4], 1 }

</bundles_post_ra>
